<compile_context>
chip_gen: v7x
topology: tpu7x:2x2x1
jax: 0.10.0
libtpu: 0.0.40
codegen_flags: <defaults>
</compile_context>

<pallas_src>
import functools

import jax
import jax.numpy as jnp
from jax.experimental import pallas as pl
from jax.experimental.pallas import tpu as pltpu

_LANE = 128
_SUBLANE = 8
_NEG_BIG = -1e30  # bias for padded logits: exp(-1e30 - m) == 0 exactly


def _round_up(a, m):
    return (a + m - 1) // m * m


def _mlp_softmax_kernel(x_ref, w1_ref, b1_ref, w2_ref, b2_ref, o_ref, *, mxu_dtype):
    # fc1 + relu: bf16 at the MXU, f32 accumulation, f32 elementwise.
    x = x_ref[...].astype(mxu_dtype)
    w1 = w1_ref[...].astype(mxu_dtype)
    h = jnp.dot(x, w1, preferred_element_type=jnp.float32) + b1_ref[...]
    h = jnp.maximum(h, 0.0)

    # fc2: output lane dim is padded to a multiple of 128; padded columns carry
    # zero weights and a -1e30 bias so they contribute nothing to the softmax.
    w2 = w2_ref[...].astype(mxu_dtype)
    logits = jnp.dot(h.astype(mxu_dtype), w2,
                     preferred_element_type=jnp.float32) + b2_ref[...]

    # Numerically stable softmax over the last dim; divide via EUP reciprocal.
    m = jnp.max(logits, axis=-1, keepdims=True)
    e = jnp.exp(logits - m)
    denom = jnp.sum(e, axis=-1, keepdims=True)
    o_ref[...] = (e * pl.reciprocal(denom, approx=True)).astype(o_ref.dtype)


def ptq_policy_network_forward(x, w1, b1, w2, b2, *, block_b=512,
                               mxu_dtype=jnp.bfloat16):
    """x: (B, D_in) f32; w1: (D_in, H); b1: (1, H); w2: (H, D_out); b2: (1, D_out)."""
    B, D_in = x.shape
    H = w1.shape[1]
    D_out = w2.shape[1]

    # Lane-dense output: pad fc2's output dim up to a multiple of 128.
    n_pad = _round_up(D_out, _LANE)
    w2_p = jnp.zeros((H, n_pad), jnp.float32).at[:, :D_out].set(w2)
    b2_p = jnp.full((1, n_pad), _NEG_BIG, jnp.float32).at[:, :D_out].set(b2)

    # Row-tile the batch (tb rows per grid step); pad B to a tile multiple.
    tb = min(block_b, _round_up(B, _SUBLANE))
    b_pad = _round_up(B, tb)
    if b_pad != B:
        x = jnp.pad(x, ((0, b_pad - B), (0, 0)))
    grid = (b_pad // tb,)

    cost = pl.CostEstimate(
        flops=2 * b_pad * (D_in * H + H * n_pad),
        transcendentals=b_pad * (n_pad + 1),  # exp + reciprocal
        bytes_accessed=4 * (b_pad * D_in + D_in * H + H + H * n_pad + n_pad
                            + b_pad * n_pad),
    )

    out = pl.pallas_call(
        functools.partial(_mlp_softmax_kernel, mxu_dtype=mxu_dtype),
        out_shape=jax.ShapeDtypeStruct((b_pad, n_pad), jnp.float32),
        grid=grid,
        in_specs=[
            pl.BlockSpec((tb, D_in), lambda i: (i, 0)),   # x: streams per tile
            pl.BlockSpec((D_in, H), lambda i: (0, 0)),    # w1: VMEM-resident
            pl.BlockSpec((1, H), lambda i: (0, 0)),       # b1: VMEM-resident
            pl.BlockSpec((H, n_pad), lambda i: (0, 0)),   # w2 (padded): resident
            pl.BlockSpec((1, n_pad), lambda i: (0, 0)),   # b2 (padded): resident
        ],
        out_specs=pl.BlockSpec((tb, n_pad), lambda i: (i, 0)),
        compiler_params=pltpu.CompilerParams(dimension_semantics=("parallel",)),
        cost_estimate=cost,
    )(x, w1, b1, w2_p, b2_p)

    return out[:B, :D_out]


def ptq_policy_network_reference(x, w1, b1, w2, b2):
    """Pure-JAX fp32 reference (matches the un-quantized torch forward)."""
    h = jnp.maximum(x @ w1 + b1, 0.0)
    return jax.nn.softmax(h @ w2 + b2, axis=-1)


def init_params(key, input_dim, hidden_dim, output_dim):
    """Deterministic init mimicking nn.Linear's U(-1/sqrt(fan_in), 1/sqrt(fan_in))."""
    k1, k2, k3, k4 = jax.random.split(key, 4)
    bound1 = 1.0 / (input_dim ** 0.5)
    bound2 = 1.0 / (hidden_dim ** 0.5)
    # Stored as (D_in, D_out) = transpose of PyTorch's (D_out, D_in) weight.
    w1 = jax.random.uniform(k1, (input_dim, hidden_dim), jnp.float32, -bound1, bound1)
    b1 = jax.random.uniform(k2, (1, hidden_dim), jnp.float32, -bound1, bound1)
    w2 = jax.random.uniform(k3, (hidden_dim, output_dim), jnp.float32, -bound2, bound2)
    b2 = jax.random.uniform(k4, (1, output_dim), jnp.float32, -bound2, bound2)
    return w1, b1, w2, b2


if __name__ == "__main__":
    # TODO(synk): torch.quantization.quantize_dynamic (dynamic int8 PTQ) is a
    # deployment-time transform, not part of the forward graph; compute here is
    # bf16-at-the-MXU with f32 accumulation (matches the un-quantized model;
    # int8 MXU has no path on v7x anyway).
    B, INPUT_DIM, HIDDEN, OUTPUT_DIM = 8, 32, 128, 8

    key = jax.random.PRNGKey(0)
    kx, kp = jax.random.split(key)
    x = jax.random.normal(kx, (B, INPUT_DIM), dtype=jnp.float32)
    w1, b1, w2, b2 = init_params(kp, INPUT_DIM, HIDDEN, OUTPUT_DIM)

    out = jax.block_until_ready(ptq_policy_network_forward(x, w1, b1, w2, b2))

    # Sanity checks: shape, softmax rows ~sum to 1, matches fp32 reference.
    assert out.shape == (B, OUTPUT_DIM)
    assert jnp.allclose(jnp.sum(out, axis=-1), 1.0, atol=5e-3)
    ref = ptq_policy_network_reference(x, w1, b1, w2, b2)
    assert jnp.allclose(out, ref, atol=3e-2), float(jnp.max(jnp.abs(out - ref)))
    print("KERNEL_OK")
</pallas_src>

<mosaic_0001>
module attributes {stable_mosaic.version = 11 : i64} {
  func.func @_mlp_softmax_kernel(%arg0: i32, %arg1: memref<8x32xf32, #tpu.memory_space<vmem>>, %arg2: memref<32x128xf32, #tpu.memory_space<vmem>>, %arg3: memref<1x128xf32, #tpu.memory_space<vmem>>, %arg4: memref<128x128xf32, #tpu.memory_space<vmem>>, %arg5: memref<1x128xf32, #tpu.memory_space<vmem>>, %arg6: memref<8x128xf32, #tpu.memory_space<vmem>>) attributes {dimension_semantics = [#tpu.dimension_semantics<parallel>], iteration_bounds = array<i64: 1>, scalar_prefetch = 0 : i64, scratch_operands = 0 : i64, tpu.core_type = #tpu.core_type<tc>, window_params = [{transform_indices = @transform_0, window_bounds = array<i64: 8, 32>}, {pipeline_mode = #tpu.pipeline_mode<synchronous>, transform_indices = @transform_1, window_bounds = array<i64: 32, 128>}, {pipeline_mode = #tpu.pipeline_mode<synchronous>, transform_indices = @transform_2, window_bounds = array<i64: 1, 128>}, {pipeline_mode = #tpu.pipeline_mode<synchronous>, transform_indices = @transform_3, window_bounds = array<i64: 128, 128>}, {pipeline_mode = #tpu.pipeline_mode<synchronous>, transform_indices = @transform_4, window_bounds = array<i64: 1, 128>}, {transform_indices = @transform_5, window_bounds = array<i64: 8, 128>}]} {
    %c0 = arith.constant 0 : index
    %c0_0 = arith.constant 0 : index
    %0 = vector.load %arg1[%c0, %c0_0] : memref<8x32xf32, #tpu.memory_space<vmem>>, vector<8x32xf32>
    %1 = arith.truncf %0 : vector<8x32xf32> to vector<8x32xbf16>
    %c0_1 = arith.constant 0 : index
    %c0_2 = arith.constant 0 : index
    %2 = vector.load %arg2[%c0_1, %c0_2] : memref<32x128xf32, #tpu.memory_space<vmem>>, vector<32x128xf32>
    %3 = arith.truncf %2 : vector<32x128xf32> to vector<32x128xbf16>
    %cst = arith.constant dense<0.000000e+00> : vector<8x128xf32>
    %4 = tpu.matmul %1, %3, %cst {dimension_numbers = #tpu.dot_dimension_numbers<[1], [0], [0], [1], [0, 0, 1, 1], [], []>} : vector<8x32xbf16>, vector<32x128xbf16>, vector<8x128xf32> -> vector<8x128xf32>
    %c0_3 = arith.constant 0 : index
    %c0_4 = arith.constant 0 : index
    %5 = vector.load %arg3[%c0_3, %c0_4] : memref<1x128xf32, #tpu.memory_space<vmem>>, vector<1x128xf32>
    %6 = vector.broadcast %5 : vector<1x128xf32> to vector<8x128xf32>
    %7 = arith.addf %4, %6 : vector<8x128xf32>
    %cst_5 = arith.constant 0.000000e+00 : f32
    %8 = vector.broadcast %cst_5 : f32 to vector<8x128xf32>
    %9 = arith.maximumf %7, %8 : vector<8x128xf32>
    %c0_6 = arith.constant 0 : index
    %c0_7 = arith.constant 0 : index
    %10 = vector.load %arg4[%c0_6, %c0_7] : memref<128x128xf32, #tpu.memory_space<vmem>>, vector<128x128xf32>
    %11 = arith.truncf %10 : vector<128x128xf32> to vector<128x128xbf16>
    %12 = arith.truncf %9 : vector<8x128xf32> to vector<8x128xbf16>
    %cst_8 = arith.constant dense<0.000000e+00> : vector<8x128xf32>
    %13 = tpu.matmul %12, %11, %cst_8 {dimension_numbers = #tpu.dot_dimension_numbers<[1], [0], [0], [1], [0, 0, 1, 1], [], []>} : vector<8x128xbf16>, vector<128x128xbf16>, vector<8x128xf32> -> vector<8x128xf32>
    %c0_9 = arith.constant 0 : index
    %c0_10 = arith.constant 0 : index
    %14 = vector.load %arg5[%c0_9, %c0_10] : memref<1x128xf32, #tpu.memory_space<vmem>>, vector<1x128xf32>
    %15 = vector.broadcast %14 : vector<1x128xf32> to vector<8x128xf32>
    %16 = arith.addf %13, %15 : vector<8x128xf32>
    %cst_11 = arith.constant dense<0xFF800000> : vector<8xf32>
    %17 = vector.multi_reduction <maximumf>, %16, %cst_11 [1] : vector<8x128xf32> to vector<8xf32>
    %18 = vector.shape_cast %17 : vector<8xf32> to vector<8x1xf32>
    %19 = vector.broadcast %18 : vector<8x1xf32> to vector<8x128xf32>
    %20 = arith.subf %16, %19 : vector<8x128xf32>
    %21 = math.exp %20 : vector<8x128xf32>
    %cst_12 = arith.constant dense<0.000000e+00> : vector<8xf32>
    %22 = vector.multi_reduction <add>, %21, %cst_12 [1] : vector<8x128xf32> to vector<8xf32>
    %23 = vector.shape_cast %22 : vector<8xf32> to vector<8x1xf32>
    %24 = tpu.reciprocal %23 {approx = true} : vector<8x1xf32> -> vector<8x1xf32>
    %25 = vector.broadcast %24 : vector<8x1xf32> to vector<8x128xf32>
    %26 = arith.mulf %21, %25 : vector<8x128xf32>
    %c0_13 = arith.constant 0 : index
    %c0_14 = arith.constant 0 : index
    %27 = vector.load %arg6[%c0_13, %c0_14] : memref<8x128xf32, #tpu.memory_space<vmem>>, vector<8x128xf32>
    tpu.vector_store %arg6[%c0_13, %c0_14], %26 {strides = array<i32>} : memref<8x128xf32, #tpu.memory_space<vmem>>, vector<8x128xf32>,
    return
  }
  func.func @transform_0(%arg0: i32) -> (i32, i32) {
    %c0_i32 = arith.constant 0 : i32
    %c0_i32_0 = arith.constant 0 : i32
    return %arg0, %c0_i32 : i32, i32
  }
  func.func @transform_1(%arg0: i32) -> (i32, i32) {
    %c0_i32 = arith.constant 0 : i32
    %c0_i32_0 = arith.constant 0 : i32
    %c0_i32_1 = arith.constant 0 : i32
    return %c0_i32, %c0_i32_0 : i32, i32
  }
  func.func @transform_2(%arg0: i32) -> (i32, i32) {
    %c0_i32 = arith.constant 0 : i32
    %c0_i32_0 = arith.constant 0 : i32
    %c0_i32_1 = arith.constant 0 : i32
    return %c0_i32, %c0_i32_0 : i32, i32
  }
  func.func @transform_3(%arg0: i32) -> (i32, i32) {
    %c0_i32 = arith.constant 0 : i32
    %c0_i32_0 = arith.constant 0 : i32
    %c0_i32_1 = arith.constant 0 : i32
    return %c0_i32, %c0_i32_0 : i32, i32
  }
  func.func @transform_4(%arg0: i32) -> (i32, i32) {
    %c0_i32 = arith.constant 0 : i32
    %c0_i32_0 = arith.constant 0 : i32
    %c0_i32_1 = arith.constant 0 : i32
    return %c0_i32, %c0_i32_0 : i32, i32
  }
  func.func @transform_5(%arg0: i32) -> (i32, i32) {
    %c0_i32 = arith.constant 0 : i32
    %c0_i32_0 = arith.constant 0 : i32
    return %arg0, %c0_i32 : i32, i32
  }
}

</mosaic_0001>

<bundles_post_ra>
// kernel: tpu_custom_call.1
= control target key start
LH: loop header
LB: loop body
LE: loop exit
PB: predicated region body
PF: predicated region fallthrough
CT: control target
= control target key end

     0   :  { %10 = vsyncpa [#allocation3], 0  ;;  %s466_s0 = inlined_call_operand.hbm [shape: f32[8,32], index: 0, kind: input, shape index: {}]   ;;  %s467_s1 = inlined_call_operand.hbm [shape: f32[32,128], index: 1, kind: input, shape index: {}]   ;;  %s468_s2 = inlined_call_operand.vmem [shape: f32[1,128], index: 2, kind: input, shape index: {}]   ;;  %s469_s3 = inlined_call_operand.hbm [shape: f32[128,128], index: 3, kind: input, shape index: {}]   ;;  %s470_s4 = inlined_call_operand.vmem [shape: f32[1,128], index: 4, kind: input, shape index: {}]   ;;  %s471_s5 = inlined_call_operand.hbm [shape: f32[8,128], index: 5, kind: output, shape index: {}]  }
   0x1   :  { %11 = vsyncpa [#allocation6], 0 }
   0x2   :  { %12 = vsyncpa [#allocation4], 0  ;;  %s368_s18 = smov [#allocation5]   ;;  %s274_s22 = scalar_lea.hbm %s467_s1, 512 }
   0x3   :  { %s28_s19 = sshll.u32 %s368_s18, 4  ;;  %p275_p0 = scmp.ne.s32.totalorder %s467_s1, %s274_s22  ;;  %s29_s19 = int_to_ptr.vmem [resolvable:$true] %s28_s19 }
   0x4   :  { %p278_p1 = scmp.lt.u32.totalorder %s274_s22, %s467_s1 }
   0x6   :  { %p280_p2 = pnand %p278_p1, %p275_p0 }
   0x8   :  { %283 = shalt.err (!%p280_p2)
}
   0x9   :  { %s284_s27 = scalar_lea.vmem %s29_s19, 512  ;;  %p289_p4 = scmp.lt.s32.totalorder %s29_s19, %s29_s19 }
   0xa   :  { %p285_p3 = scmp.ne.s32.totalorder %s29_s19, %s284_s27  ;;  %p290_p5 = scmp.lt.s32.totalorder %s284_s27, %s284_s27 }
   0xc   :  { %p291_p6 = por %p290_p5, %p289_p4 }
   0xe   :  { %p292_p7 = pnand %p291_p6, %p285_p3 }
  0x10   :  { %295 = shalt.err (!%p292_p7)
}
  0x11   :  { %s369_s28 = smov 128   ;;  %s370_s29 = smov 8  }
  0x12   :  { %34 = dma.hbm_to_vmem [thread:$0]  %s467_s1, 512, %s29_s19, [#allocation6], %s369_s28, %s369_s28, %s370_s29  }
  0x13   :  { %s371_s7 = smov [#allocation2]   ;;  %s372_s9 = smov [#allocation7]  }
  0x14   :  { %s19_s8 = sshll.u32 %s371_s7, 4  ;;  %s42_s10 = sshll.u32 %s372_s9, 4  ;;  %s20_s8 = int_to_ptr.vmem [resolvable:$true] %s19_s8  ;;  %s43_s10 = int_to_ptr.vmem [resolvable:$true] %s42_s10 }
  0x15   :  { %s296_s13 = scalar_lea.hbm %s466_s0, 128 }
  0x16   :  { %p297_p8 = scmp.ne.s32.totalorder %s466_s0, %s296_s13  ;;  %p300_p9 = scmp.lt.u32.totalorder %s296_s13, %s466_s0 }
  0x18   :  { %p302_p10 = pnand %p300_p9, %p297_p8 }
  0x1a   :  { %305 = shalt.err (!%p302_p10)
}
  0x1b   :  { %s306_s1 = scalar_lea.vmem %s20_s8, 128  ;;  %p311_p12 = scmp.lt.s32.totalorder %s20_s8, %s20_s8 }
  0x1c   :  { %p307_p11 = scmp.ne.s32.totalorder %s20_s8, %s306_s1  ;;  %p312_p13 = scmp.lt.s32.totalorder %s306_s1, %s306_s1 }
  0x1e   :  { %p313_p0 = por %p312_p13, %p311_p12 }
  0x20   :  { %p314_p1 = pnand %p313_p0, %p307_p11 }
  0x22   :  { %317 = shalt.err (!%p314_p1)
}
  0x23   :  { %22 = dma.hbm_to_vmem [thread:$0]  %s466_s0, 128, %s20_s8, [#allocation3]  }
  0x24   :  { %s318_s22 = scalar_lea.hbm %s469_s3, 2048 }
  0x25   :  { %p319_p2 = scmp.ne.s32.totalorder %s469_s3, %s318_s22  ;;  %p322_p3 = scmp.lt.u32.totalorder %s318_s22, %s469_s3 }
  0x27   :  { %p324_p4 = pnand %p322_p3, %p319_p2 }
  0x29   :  { %327 = shalt.err (!%p324_p4)
}
  0x2a   :  { %s328_s27 = scalar_lea.vmem %s43_s10, 2048  ;;  %p333_p6 = scmp.lt.s32.totalorder %s43_s10, %s43_s10 }
  0x2b   :  { %p329_p5 = scmp.ne.s32.totalorder %s43_s10, %s328_s27  ;;  %p334_p7 = scmp.lt.s32.totalorder %s328_s27, %s328_s27 }
  0x2d   :  { %p335_p8 = por %p334_p7, %p333_p6 }
  0x2f   :  { %p336_p9 = pnand %p335_p8, %p329_p5 }
  0x31   :  { %339 = shalt.err (!%p336_p9)
}
  0x32   :  { %48 = dma.hbm_to_vmem [thread:$0]  %s469_s3, 2048, %s43_s10, [#allocation6], %s369_s28, %s369_s28, %s370_s29  }
  0x33   :  { %362 = dma.done.wait [#allocation3], 128  }
  0x34   :  { %363 = vsyncadd [#allocation3], 4294967168 }
  0x35   :  { %364 = dma.done.wait [#allocation6], 2560  }
  0x36   :  { %365 = vsyncadd [#allocation6], 4294964736  ;;  %v373_v0 = vmov 0.0   ;;  %vm374_vm0 = vmmov 0   ;;  %v63_v1 = vld [vmem:[#allocation5] sm:$0xff]  ;;  %v64_v2 = vld [vmem:[#allocation5 + $0x8] sm:$0xff] }
  0x37   :  { %234 = vmatprep.subr.bf16.mxu0 %v373_v0  ;;  %238 = vmatprep.mubr.msk.bf16.mxu0 %vm374_vm0, %v373_v0  ;;  %v65_v3 = vld [vmem:[#allocation5 + $0x10] sm:$0xff]  ;;  %v67_v4 = vpack.c.bf16 %v64_v2, %v63_v1  ;;  %v66_v5 = vld [vmem:[#allocation5 + $0x18] sm:$0xff]  ;;  %v121_v6 = vld [vmem:[#allocation7] sm:$0xff]  ;;  %vm76_vm1 = vcmask 261120  }
  0x38   :  { %242 = vmatprep.subr.bf16.mxu1 %v373_v0  ;;  %258 = vmatprep.mubr.msk.bf16.mxu1 %vm374_vm0, %v373_v0  ;;  %v122_v7 = vld [vmem:[#allocation7 + $0x8] sm:$0xff]  ;;  %v123_v8 = vld [vmem:[#allocation7 + $0x10] sm:$0xff]  ;;  %v124_v9 = vld [vmem:[#allocation7 + $0x18] sm:$0xff]  ;;  %v68_v10 = vpack.c.bf16 %v66_v5, %v65_v3 }
  0x39   :  { %235 = vmatpush3.bf16.msra.mxu0 %v67_v4  ;;  %v61_v11 = vld [vmem:[#allocation2] sm:$0xff]  ;;  %v137_v12 = vpack.c.bf16 %v122_v7, %v121_v6  ;;  %v138_v13 = vpack.c.bf16 %v124_v9, %v123_v8  ;;  %v125_v15 = vld [vmem:[#allocation7 + $0x20] sm:$0xff]  ;;  %v126_v16 = vld [vmem:[#allocation7 + $0x28] sm:$0xff] }
  0x3a   :  { %236 = vmatprep.subr.bf16.mxu0 %v373_v0  ;;  %v62_v14 = vpack.c.bf16 %v61_v11, %v61_v11  ;;  %v139_v17 = vpack.c.bf16 %v126_v16, %v125_v15  ;;  %v127_v18 = vld [vmem:[#allocation7 + $0x30] sm:$0xff]  ;;  %v128_v19 = vld [vmem:[#allocation7 + $0x38] sm:$0xff]  ;;  %v129_v21 = vld [vmem:[#allocation7 + $0x40] sm:$0xff] }
  0x3b   :  { %243 = vmatpush3.bf16.msra.mxu1 %v137_v12  ;;  %v140_v20 = vpack.c.bf16 %v128_v19, %v127_v18  ;;  %v130_v22 = vld [vmem:[#allocation7 + $0x48] sm:$0xff]  ;;  %v131_v24 = vld [vmem:[#allocation7 + $0x50] sm:$0xff]  ;;  %v132_v25 = vld [vmem:[#allocation7 + $0x58] sm:$0xff] }
  0x3c   :  { %244 = vmatprep.subr.bf16.mxu1 %v373_v0  ;;  %v141_v23 = vpack.c.bf16 %v130_v22, %v129_v21  ;;  %v142_v26 = vpack.c.bf16 %v132_v25, %v131_v24  ;;  %v133_v27 = vld [vmem:[#allocation7 + $0x60] sm:$0xff]  ;;  %v134_v28 = vld [vmem:[#allocation7 + $0x68] sm:$0xff]  ;;  %v135_v30 = vld [vmem:[#allocation7 + $0x70] sm:$0xff] }
  0x3d   :  { %237 = vmatpush3.bf16.msra.mxu0 %v68_v10  ;;  %v143_v29 = vpack.c.bf16 %v134_v28, %v133_v27  ;;  %v136_v31 = vld [vmem:[#allocation7 + $0x78] sm:$0xff] }
  0x3e   :  { %v144_v32 = vpack.c.bf16 %v136_v31, %v135_v30  ;;  %v219_v33 = vld [vmem:[%s468_s2] ss:$0 sm:$0xff]  ;;  %s375_s2 = smov [#allocation8]  }
  0x3f   :  { %245 = vmatpush3.bf16.msra.mxu1 %v138_v13  ;;  %v221_v41 = vld [vmem:[%s470_s4] ss:$0 sm:$0xff]  ;;  %s209_s7 = sshll.u32 %s375_s2, 4  ;;  %s210_s7 = int_to_ptr.vmem [resolvable:$true] %s209_s7 }
  0x40   :  { %239 = vmatmul.mubr.msk.bf16.vlgmr.msra.gmra.mrb[0].mxu0 %vm76_vm1, %v62_v14  ;;  %246 = vmatprep.subr.bf16.mxu1 %v373_v0  ;;  %s340_s4 = scalar_lea.vmem %s210_s7, 128  ;;  %p345_p11 = scmp.lt.s32.totalorder %s210_s7, %s210_s7 }
  0x41   :  { %p341_p10 = scmp.ne.s32.totalorder %s210_s7, %s340_s4  ;;  %p346_p12 = scmp.lt.s32.totalorder %s340_s4, %s340_s4 }
  0x43   :  { %247 = vmatpush3.bf16.msra.mxu1 %v139_v17  ;;  %p347_p13 = por %p346_p12, %p345_p11 }
  0x44   :  { %248 = vmatprep.subr.bf16.mxu1 %v373_v0 }
  0x45   :  { %p348_p0 = pnand %p347_p13, %p341_p10 }
  0x47   :  { %249 = vmatpush3.bf16.msra.mxu1 %v140_v20 }
  0x48   :  { %250 = vmatprep.subr.bf16.mxu1 %v373_v0 }
  0x4b   :  { %251 = vmatpush3.bf16.msra.mxu1 %v141_v23 }
  0x4c   :  { %252 = vmatprep.subr.bf16.mxu1 %v373_v0 }
  0x4f   :  { %253 = vmatpush3.bf16.msra.mxu1 %v142_v26 }
  0x50   :  { %254 = vmatprep.subr.bf16.mxu1 %v373_v0 }
  0x53   :  { %255 = vmatpush3.bf16.msra.mxu1 %v143_v29 }
  0x54   :  { %256 = vmatprep.subr.bf16.mxu1 %v373_v0 }
  0x57   :  { %257 = vmatpush3.bf16.msra.mxu1 %v144_v32 }
 0x113   :  { %v114_v34 = vpop.f32.mrb[0].mxu0 }
 0x114   :  { %v115_v35 = vadd.f32 %v219_v33, %v114_v34  ;;  %v240_v36 = vpop.f32.mrb[1].mxu0 }
 0x115   :  { %v117_v37 = vpop.f32.mrb[2].mxu0 }
 0x116   :  { %v120_v38 = vmax.f32 %v115_v35, 0.0  ;;  %v241_v39 = vpop.f32.mrb[3].mxu0 }
 0x118   :  { %v145_v40 = vpack.c.bf16 %v120_v38, %v120_v38 }
 0x11a   :  { %259 = vmatmul.mubr.bf16.vlgmr.msra.gmra.mrb[0].mxu1 %v145_v40 }
 0x1ed   :  { %v187_v42 = vpop.f32.mrb[0].mxu1 }
 0x1ee   :  { %v188_v43 = vadd.f32 %v221_v41, %v187_v42  ;;  %v260_v44 = vpop.f32.mrb[1].mxu1 }
 0x1ef   :  { %v190_v45 = vpop.f32.mrb[2].mxu1 }
 0x1f0   :  { %193 = vmax.xlane.f32.xlu0 %v188_v43  ;;  %v261_v46 = vpop.f32.mrb[3].mxu1 }
 0x27d   :  { %v194_v47 = vpop.xlane.xlu0 %193 }
 0x27e   :  { %v195_v48 = vsub.f32 %v188_v43, %v194_v47 }
 0x280   :  { %v196_v49 = vmul.f32 1.442695, %v195_v48 }
 0x282   :  { %270 = vpow2.f32 %v196_v49 }
 0x28c   :  { %v271_v50 = vpop.eup %270 }
 0x28d   :  { %198 = vadd.xlane.f32.xlu0 %v271_v50 }
 0x31a   :  { %v199_v51 = vpop.xlane.xlu0 %198 }
 0x31b   :  { %272 = vrcp.f32 %v199_v51 }
 0x325   :  { %v273_v52 = vpop.eup %272 }
 0x326   :  { %v201_v53 = vmul.f32 %v273_v52, %v271_v50 }
 0x328   :  { %202 = vst [vmem:[#allocation8] sm:$0xff] %v201_v53 }
 0x329   :  { %351 = shalt.err (!%p348_p0)
}
 0x32a   :  { %s352_s10 = scalar_lea.hbm %s471_s5, 128 }
 0x32b   :  { %p353_p1 = scmp.ne.s32.totalorder %s471_s5, %s352_s10  ;;  %p356_p2 = scmp.lt.u32.totalorder %s352_s10, %s471_s5 }
 0x32d   :  { %p358_p3 = pnand %p356_p2, %p353_p1 }
 0x32f   :  { %361 = shalt.err (!%p358_p3)
}
 0x330   :  { %212 = dma.vmem_to_hbm [thread:$0]  %s210_s7, 128, %s471_s5, [#allocation4]  }
 0x331   :  { %366 = dma.done.wait [#allocation4], 128  }
 0x332   :  { %367 = vsyncadd [#allocation4], 4294967168 }
 0x333   :  { %216 = vsyncpa [#allocation3], 1 }
 0x334   :  { %217 = vsyncpa [#allocation6], 1 }
 0x335   :  { %218 = vsyncpa [#allocation4], 1 }

</bundles_post_ra>
